<compile_context>
chip_gen: v5e
topology: v5e:2x2
jax: 0.10.0
libtpu: 0.0.40
codegen_flags: <defaults>
</compile_context>

<pallas_src>
import functools

import numpy as np
import jax
import jax.numpy as jnp
from jax.experimental import pallas as pl
from jax.experimental.pallas import tpu as pltpu

# ----------------------------- config (args) ---------------------------------
EMBED_NUM = 50          # vocab size V
EMBED_DIM = 32          # D
CLASS_NUM = 4           # C
KERNEL_NUM = 8          # K (output channels per conv)
KERNEL_SIZES = (3, 4, 5)
BATCH = 2
SEQ_LEN = 16

_OUT_LANES = 128        # lane-dense output slab width


def _round_up(x, m):
    return ((x + m - 1) // m) * m


# ------------------------------- Pallas kernel --------------------------------
def _cnn_text_kernel(ks_max, l_out,
                     tok_ref, table_ref, cw_ref, cb_ref, fw_ref, fb_ref,
                     mask_ref, out_ref):
    """Fused embed + conv(all ks) + max-over-time + bias/ReLU + Linear.

    tok_ref   : (B_pad*L_pad, 1) int32   token ids (-1 sentinel => zero row)
    table_ref : (V, D)           f32     embedding table
    cw_ref    : (ks_max*D, n_ks*K) f32   packed conv weights (zero-padded taps)
    cb_ref    : (1, n_ks*K)        f32   packed conv biases
    fw_ref    : (n_ks*K, 128)      f32   fc weight, zero-padded to 128 lanes
    fb_ref    : (1, 128)           f32   fc bias, zero-padded to 128 lanes
    mask_ref  : (l_out, n_ks*K)    f32   additive validity mask (0 or -3e38)
    out_ref   : (B_pad, 128)       f32   lane-dense logits slab
    """
    V, D = table_ref.shape
    BL = tok_ref.shape[0]
    B = out_ref.shape[0]
    L_pad = BL // B
    nF = cw_ref.shape[1]

    # ---- embedding lookup fused in-kernel: one-hot matmul on the MXU (exact) ----
    tok = tok_ref[...]                                              # (B*L_pad, 1)
    onehot = (jax.lax.broadcasted_iota(jnp.int32, (BL, V), 1) == tok
              ).astype(jnp.float32)
    emb = jnp.dot(onehot, table_ref[...],
                  preferred_element_type=jnp.float32)               # (B*L_pad, D)
    emb = emb.reshape(B, L_pad, D)

    # ---- im2col: ONE matmul for all kernel sizes / taps ----
    # x[b, p, j*D + d] = emb[b, p + j, d]
    x = jnp.concatenate([emb[:, j:j + l_out, :] for j in range(ks_max)], axis=-1)
    x = x.reshape(B * l_out, ks_max * D)                            # (128, ks_max*D)
    conv = jnp.dot(x, cw_ref[...],
                   preferred_element_type=jnp.float32)              # (128, nF)
    conv = conv.reshape(B, l_out, nF)

    # ---- constant additive mask for invalid/padded positions, then max-pool ----
    pooled = jnp.max(conv + mask_ref[...][None, :, :], axis=1)      # (B, nF)

    # bias + ReLU after the pool (exact: max(relu(x+b)) == relu(max(x)+b))
    feat = jnp.maximum(pooled + cb_ref[...], 0.0)

    # ---- classifier, written to a lane-dense (B, 128) slab ----
    out_ref[...] = jnp.dot(feat, fw_ref[...],
                           preferred_element_type=jnp.float32) + fb_ref[...]


# --------------------------------- wrapper -------------------------------------
def make_cnn_text_forward(embed_table, conv_ws, conv_bs, fc_w, fc_b, seq_len):
    """One-time parameter packing; returns a jitted forward(tokens) -> (B, C)."""
    L = int(seq_len)
    assert L >= max(KERNEL_SIZES), (
        "seq_len must be >= max(kernel_sizes); PyTorch Conv2d would raise")

    V, D = embed_table.shape
    K = conv_ws[0].shape[-1]
    n_ks = len(KERNEL_SIZES)
    nF = n_ks * K
    C = fc_w.shape[-1]
    ks_max = max(KERNEL_SIZES)
    ks_min = min(KERNEL_SIZES)

    l_out = _round_up(L - ks_min + 1, 8)             # 14 -> 16  (B_pad*l_out = 128)
    L_pad = _round_up(l_out + ks_max - 1, 8)         # 20 -> 24  (8-aligned time axis)

    # ---- hot-path-free parameter packing (done once, on host) ----
    cw = np.zeros((ks_max * D, nF), np.float32)
    for g, (ks, w) in enumerate(zip(KERNEL_SIZES, conv_ws)):
        cw[: ks * D, g * K:(g + 1) * K] = np.asarray(w, np.float32).reshape(ks * D, K)
    cb = np.concatenate(
        [np.asarray(b, np.float32).reshape(1, K) for b in conv_bs], axis=-1)

    fw = np.zeros((nF, _OUT_LANES), np.float32)
    fw[:, :C] = np.asarray(fc_w, np.float32)
    fb = np.zeros((1, _OUT_LANES), np.float32)
    fb[:, :C] = np.asarray(fc_b, np.float32).reshape(1, C)

    mask = np.zeros((l_out, nF), np.float32)         # 0 valid, -3e38 invalid
    for g, ks in enumerate(KERNEL_SIZES):
        mask[L - ks + 1:, g * K:(g + 1) * K] = -3.0e38

    table_d = jnp.asarray(embed_table, jnp.float32)
    cw_d, cb_d, fw_d, fb_d, mask_d = map(jnp.asarray, (cw, cb, fw, fb, mask))

    kernel = functools.partial(_cnn_text_kernel, ks_max, l_out)
    vmem = pl.BlockSpec(memory_space=pltpu.MemorySpace.VMEM)

    @jax.jit
    def forward(tokens):
        B, Lt = tokens.shape
        assert Lt == L, (Lt, L)
        B_pad = _round_up(max(B, 1), 8)
        # Pad batch + time with -1 sentinel (one-hot of -1 => zero embedding row).
        tok_pad = jnp.full((B_pad, L_pad), -1, jnp.int32)
        tok_pad = tok_pad.at[:B, :L].set(tokens.astype(jnp.int32))
        tok_col = tok_pad.reshape(B_pad * L_pad, 1)

        out_full = pl.pallas_call(
            kernel,
            out_shape=jax.ShapeDtypeStruct((B_pad, _OUT_LANES), jnp.float32),
            in_specs=[vmem] * 7,
            out_specs=vmem,
        )(tok_col, table_d, cw_d, cb_d, fw_d, fb_d, mask_d)

        return out_full[:B, :C]

    return forward


# ----------------------------- pure-JAX reference ------------------------------
def _reference(tokens, embed_table, conv_ws, conv_bs, fc_w, fc_b):
    emb = jnp.take(embed_table, tokens, axis=0).astype(jnp.float32)   # (B, L, D)
    feats = []
    for ks, w, b in zip(KERNEL_SIZES, conv_ws, conv_bs):
        l_out = tokens.shape[1] - ks + 1
        acc = jnp.zeros((tokens.shape[0], l_out, w.shape[-1]), jnp.float32)
        for j in range(ks):
            acc = acc + jnp.einsum("bld,dk->blk", emb[:, j:j + l_out, :], w[j])
        acc = jnp.maximum(acc + b[None, :, :], 0.0)
        feats.append(jnp.max(acc, axis=1))
    feat = jnp.concatenate(feats, axis=-1)
    return jnp.dot(feat, fc_w) + fc_b


# --------------------------------- driver -------------------------------------
if __name__ == "__main__":
    key = jax.random.PRNGKey(0)
    k_emb, k_tok, k_fcw, k_fcb, *k_conv = jax.random.split(key, 4 + 2 * len(KERNEL_SIZES))

    # Deterministic synthetic parameters (module __init__ shapes).
    embed_table = jax.random.normal(k_emb, (EMBED_NUM, EMBED_DIM), jnp.float32) * 0.1

    conv_ws, conv_bs = [], []
    for i, ks in enumerate(KERNEL_SIZES):
        conv_ws.append(
            jax.random.normal(k_conv[2 * i], (ks, EMBED_DIM, KERNEL_NUM), jnp.float32) * 0.1
        )
        conv_bs.append(
            jax.random.normal(k_conv[2 * i + 1], (1, KERNEL_NUM), jnp.float32) * 0.1
        )

    fc_w = jax.random.normal(
        k_fcw, (len(KERNEL_SIZES) * KERNEL_NUM, CLASS_NUM), jnp.float32) * 0.1
    fc_b = jax.random.normal(k_fcb, (1, CLASS_NUM), jnp.float32) * 0.1

    tokens = jax.random.randint(k_tok, (BATCH, SEQ_LEN), 0, EMBED_NUM, jnp.int32)

    forward = make_cnn_text_forward(embed_table, conv_ws, conv_bs, fc_w, fc_b, SEQ_LEN)
    logits = forward(tokens)
    jax.block_until_ready(logits)
    assert logits.shape == (BATCH, CLASS_NUM), logits.shape

    ref = _reference(tokens, embed_table, conv_ws, conv_bs, fc_w, fc_b)
    assert jnp.allclose(logits, ref, atol=1e-4, rtol=1e-4), (logits, ref)

    print("KERNEL_OK")
</pallas_src>

<mosaic_0001>
module attributes {stable_mosaic.version = 11 : i64} {
  func.func @_cnn_text_kernel(%arg0: memref<192x1xi32, #tpu.memory_space<vmem>>, %arg1: memref<50x32xf32, #tpu.memory_space<vmem>>, %arg2: memref<160x24xf32, #tpu.memory_space<vmem>>, %arg3: memref<1x24xf32, #tpu.memory_space<vmem>>, %arg4: memref<24x128xf32, #tpu.memory_space<vmem>>, %arg5: memref<1x128xf32, #tpu.memory_space<vmem>>, %arg6: memref<16x24xf32, #tpu.memory_space<vmem>>, %arg7: memref<8x128xf32, #tpu.memory_space<vmem>>) attributes {dimension_semantics = [], scalar_prefetch = 0 : i64, scratch_operands = 0 : i64, tpu.core_type = #tpu.core_type<tc>} {
    %c0 = arith.constant 0 : index
    %c0_0 = arith.constant 0 : index
    %0 = vector.load %arg0[%c0, %c0_0] : memref<192x1xi32, #tpu.memory_space<vmem>>, vector<192x1xi32>
    %1 = tpu.iota {dimensions = array<i32: 1>} : vector<192x50xi32>
    %2 = vector.broadcast %0 : vector<192x1xi32> to vector<192x50xi32>
    %3 = arith.cmpi eq, %1, %2 : vector<192x50xi32>
    %4 = arith.extui %3 : vector<192x50xi1> to vector<192x50xi32>
    %5 = arith.sitofp %4 : vector<192x50xi32> to vector<192x50xf32>
    %c0_1 = arith.constant 0 : index
    %c0_2 = arith.constant 0 : index
    %6 = vector.load %arg1[%c0_1, %c0_2] : memref<50x32xf32, #tpu.memory_space<vmem>>, vector<50x32xf32>
    %cst = arith.constant dense<0.000000e+00> : vector<192x32xf32>
    %7 = tpu.matmul %5, %6, %cst {dimension_numbers = #tpu.dot_dimension_numbers<[1], [0], [0], [1], [0, 0, 1, 1], [], []>} : vector<192x50xf32>, vector<50x32xf32>, vector<192x32xf32> -> vector<192x32xf32>
    %8 = vector.shape_cast %7 : vector<192x32xf32> to vector<8x24x32xf32>
    %9 = vector.extract_strided_slice %8 {offsets = [0, 0, 0], sizes = [8, 16, 32], strides = [1, 1, 1]} : vector<8x24x32xf32> to vector<8x16x32xf32>
    %10 = vector.extract_strided_slice %8 {offsets = [0, 1, 0], sizes = [8, 16, 32], strides = [1, 1, 1]} : vector<8x24x32xf32> to vector<8x16x32xf32>
    %11 = vector.extract_strided_slice %8 {offsets = [0, 2, 0], sizes = [8, 16, 32], strides = [1, 1, 1]} : vector<8x24x32xf32> to vector<8x16x32xf32>
    %12 = vector.extract_strided_slice %8 {offsets = [0, 3, 0], sizes = [8, 16, 32], strides = [1, 1, 1]} : vector<8x24x32xf32> to vector<8x16x32xf32>
    %13 = vector.extract_strided_slice %8 {offsets = [0, 4, 0], sizes = [8, 16, 32], strides = [1, 1, 1]} : vector<8x24x32xf32> to vector<8x16x32xf32>
    %14 = tpu.concatenate %9, %10, %11, %12, %13 in 2 : vector<8x16x32xf32>, vector<8x16x32xf32>, vector<8x16x32xf32>, vector<8x16x32xf32>, vector<8x16x32xf32> -> vector<8x16x160xf32>
    %15 = vector.shape_cast %14 : vector<8x16x160xf32> to vector<128x160xf32>
    %c0_3 = arith.constant 0 : index
    %c0_4 = arith.constant 0 : index
    %16 = vector.load %arg2[%c0_3, %c0_4] : memref<160x24xf32, #tpu.memory_space<vmem>>, vector<160x24xf32>
    %cst_5 = arith.constant dense<0.000000e+00> : vector<128x24xf32>
    %17 = tpu.matmul %15, %16, %cst_5 {dimension_numbers = #tpu.dot_dimension_numbers<[1], [0], [0], [1], [0, 0, 1, 1], [], []>} : vector<128x160xf32>, vector<160x24xf32>, vector<128x24xf32> -> vector<128x24xf32>
    %18 = vector.shape_cast %17 : vector<128x24xf32> to vector<8x16x24xf32>
    %c0_6 = arith.constant 0 : index
    %c0_7 = arith.constant 0 : index
    %19 = vector.load %arg6[%c0_6, %c0_7] : memref<16x24xf32, #tpu.memory_space<vmem>>, vector<16x24xf32>
    %20 = vector.shape_cast %19 : vector<16x24xf32> to vector<1x16x24xf32>
    %21 = vector.broadcast %20 : vector<1x16x24xf32> to vector<8x16x24xf32>
    %22 = arith.addf %18, %21 : vector<8x16x24xf32>
    %cst_8 = arith.constant dense<0xFF800000> : vector<8x24xf32>
    %23 = vector.multi_reduction <maximumf>, %22, %cst_8 [1] : vector<8x16x24xf32> to vector<8x24xf32>
    %c0_9 = arith.constant 0 : index
    %c0_10 = arith.constant 0 : index
    %24 = vector.load %arg3[%c0_9, %c0_10] : memref<1x24xf32, #tpu.memory_space<vmem>>, vector<1x24xf32>
    %25 = vector.broadcast %24 : vector<1x24xf32> to vector<8x24xf32>
    %26 = arith.addf %23, %25 : vector<8x24xf32>
    %cst_11 = arith.constant 0.000000e+00 : f32
    %27 = vector.broadcast %cst_11 : f32 to vector<8x24xf32>
    %28 = arith.maximumf %26, %27 : vector<8x24xf32>
    %c0_12 = arith.constant 0 : index
    %c0_13 = arith.constant 0 : index
    %29 = vector.load %arg4[%c0_12, %c0_13] : memref<24x128xf32, #tpu.memory_space<vmem>>, vector<24x128xf32>
    %cst_14 = arith.constant dense<0.000000e+00> : vector<8x128xf32>
    %30 = tpu.matmul %28, %29, %cst_14 {dimension_numbers = #tpu.dot_dimension_numbers<[1], [0], [0], [1], [0, 0, 1, 1], [], []>} : vector<8x24xf32>, vector<24x128xf32>, vector<8x128xf32> -> vector<8x128xf32>
    %c0_15 = arith.constant 0 : index
    %c0_16 = arith.constant 0 : index
    %31 = vector.load %arg5[%c0_15, %c0_16] : memref<1x128xf32, #tpu.memory_space<vmem>>, vector<1x128xf32>
    %32 = vector.broadcast %31 : vector<1x128xf32> to vector<8x128xf32>
    %33 = arith.addf %30, %32 : vector<8x128xf32>
    %c0_17 = arith.constant 0 : index
    %c0_18 = arith.constant 0 : index
    %34 = vector.load %arg7[%c0_17, %c0_18] : memref<8x128xf32, #tpu.memory_space<vmem>>, vector<8x128xf32>
    tpu.vector_store %arg7[%c0_17, %c0_18], %33 {strides = array<i32>} : memref<8x128xf32, #tpu.memory_space<vmem>>, vector<8x128xf32>,
    return
  }
}

</mosaic_0001>

<bundles_post_ra>
// kernel: forward.1
= control target key start
LH: loop header
LB: loop body
LE: loop exit
PB: predicated region body
PF: predicated region fallthrough
CT: control target
= control target key end

     0   :  { %12 = vsyncpa [#allocation3], 0  ;;  %s1363_s27 = smov [#allocation2]   ;;  %s1364_s29 = smov 128   ;;  %s1986_s0 = inlined_call_operand.vmem [shape: s32[192,1], index: 0, kind: input, shape index: {}]   ;;  %s1987_s1 = inlined_call_operand.hbm [shape: f32[50,32], index: 1, kind: input, shape index: {}]   ;;  %s1988_s2 = inlined_call_operand.vmem [shape: f32[160,24], index: 2, kind: input, shape index: {}]   ;;  %s1989_s3 = inlined_call_operand.vmem [shape: f32[1,24], index: 3, kind: input, shape index: {}]   ;;  %s1990_s4 = inlined_call_operand.vmem [shape: f32[24,128], index: 4, kind: input, shape index: {}]   ;;  %s1991_s5 = inlined_call_operand.vmem [shape: f32[1,128], index: 5, kind: input, shape index: {}]   ;;  %s1992_s6 = inlined_call_operand.vmem [shape: f32[16,24], index: 6, kind: input, shape index: {}]   ;;  %s1993_s7 = inlined_call_operand.vmem [shape: f32[8,128], index: 7, kind: output, shape index: {}]  }
   0x1   :  { %s19_s26 = sshll.u32 %s1987_s1, 4  ;;  %s21_s28 = sshll.u32 %s1363_s27, 4  ;;  %s20_s26 = int_to_ptr.hbm [resolvable:$true] %s19_s26  ;;  %s22_s28 = int_to_ptr.vmem [resolvable:$true] %s21_s28 }
   0x2   :  { %s1365_s30 = smov 8  }
   0x3   :  { %27 = dma.hbm_to_vmem [thread:$0]  %s20_s26, 896, %s22_s28, [#allocation3], %s1364_s29, %s1364_s29, %s1365_s30  }
   0x4   :  { %1361 = dma.done.wait [#allocation3], 896  }
   0x5   :  { %1362 = vsyncadd [#allocation3], 4294966400  ;;  %v1366_v0 = vmov 0   ;;  %v46_v1 = vld [vmem:[%s1986_s0 + $0x20] sm:$0xff]  ;;  %v44_v2 = vld [vmem:[%s1986_s0 + $0x10] sm:$0xff]  ;;  %vm292_vm0 = vcmask 1041408   ;;  %v66_v34 = vlaneseq }
   0x6   :  { %1224 = vset.pattern.permute.xlu2 %v1366_v0  ;;  %1223 = vset.pattern.permute.xlu1 %v1366_v0  ;;  %v42_v3 = vld [vmem:[%s1986_s0] sm:$0xff]  ;;  %v47_v4 = vld [vmem:[%s1986_s0 + $0x28] sm:$0xff]  ;;  %v45_v5 = vld [vmem:[%s1986_s0 + $0x18] sm:$0xff]  ;;  %v1367_v37 = vmov 0.0   ;;  %vm219_vm2 = vcmask 408576   ;;  %s1368_s14 = smov 96  }
   0x7   :  { %1222 = vset.pattern.permute.xlu0 %v1366_v0  ;;  %81 = vperm.xlu2 %1224, %v46_v1   ;;  %v43_v6 = vld [vmem:[%s1986_s0 + $0x8] sm:$0xff]  ;;  %v57_v7 = vld [vmem:[%s1986_s0 + $0x78] sm:$0xff]  ;;  %v48_v9 = vld [vmem:[%s1986_s0 + $0x30] sm:$0xff]  ;;  %v1486_v35 = vand.u32 127, %v66_v34  ;;  %s1369_s15 = smov 64   ;;  %s1370_s16 = smov 32  }
   0x8   :  { %75 = vperm.xlu1 %1223, %v44_v2   ;;  %69 = vperm.xlu0 %1222, %v42_v3   ;;  %v49_v8 = vld [vmem:[%s1986_s0 + $0x38] sm:$0xff]  ;;  %v51_v10 = vld [vmem:[%s1986_s0 + $0x48] sm:$0xff]  ;;  %v58_v11 = vld [vmem:[%s1986_s0 + $0x80] sm:$0xff] }
   0x9   :  { %v50_v12 = vld [vmem:[%s1986_s0 + $0x40] sm:$0xff]  ;;  %v60_v13 = vld [vmem:[%s1986_s0 + $0x90] sm:$0xff]  ;;  %v59_v15 = vld [vmem:[%s1986_s0 + $0x88] sm:$0xff] }
   0xa   :  { %v52_v14 = vld [vmem:[%s1986_s0 + $0x50] sm:$0xff]  ;;  %v54_v16 = vld [vmem:[%s1986_s0 + $0x60] sm:$0xff]  ;;  %v61_v17 = vld [vmem:[%s1986_s0 + $0x98] sm:$0xff] }
   0xb   :  { %v53_v18 = vld [vmem:[%s1986_s0 + $0x58] sm:$0xff]  ;;  %v63_v19 = vld [vmem:[%s1986_s0 + $0xa8] sm:$0xff]  ;;  %v62_v21 = vld [vmem:[%s1986_s0 + $0xa0] sm:$0xff] }
   0xc   :  { %v55_v20 = vld [vmem:[%s1986_s0 + $0x68] sm:$0xff]  ;;  %v65_v22 = vld [vmem:[%s1986_s0 + $0xb8] sm:$0xff]  ;;  %v64_v23 = vld [vmem:[%s1986_s0 + $0xb0] sm:$0xff] }
   0xd   :  { %v56_v24 = vld [vmem:[%s1986_s0 + $0x70] sm:$0xff]  ;;  %v217_v26 = vld [vmem:[#allocation2 + $0x28] sm:$0xff]  ;;  %v216_v27 = vld [vmem:[#allocation2 + $0x20] sm:$0xff] }
   0xe   :  { %v218_v25 = vld [vmem:[#allocation2 + $0x30] sm:$0x3]  ;;  %v215_v28 = vld [vmem:[#allocation2 + $0x18] sm:$0xff]  ;;  %v213_v30 = vld [vmem:[#allocation2 + $0x8] sm:$0xff] }
   0xf   :  { %84 = vperm.xlu2 %1224, %v47_v4   ;;  %1149 = vmatpush.msk.msra.mxu0 %vm292_vm0, %v218_v25  ;;  %v214_v29 = vld [vmem:[#allocation2 + $0x10] sm:$0xff]  ;;  %v212_v31 = vld [vmem:[#allocation2] sm:$0xff] }
  0x10   :  { %78 = vperm.xlu1 %1223, %v45_v5   ;;  %72 = vperm.xlu0 %1222, %v43_v6  }
  0x11   :  { %1191 = vmatpush.msk.msra.mxu3 %vm292_vm0, %v218_v25  ;;  %306 = vmatpush.msra.mxu0 %v217_v26 }
  0x13   :  { %1192 = vmatpush.msra.mxu3 %v217_v26  ;;  %307 = vmatpush.msra.mxu0 %v216_v27 }
  0x15   :  { %1193 = vmatpush.msra.mxu3 %v216_v27  ;;  %308 = vmatpush.msra.mxu0 %v215_v28 }
  0x17   :  { %114 = vperm.xlu2 %1224, %v57_v7   ;;  %1194 = vmatpush.msra.mxu3 %v215_v28 }
  0x18   :  { %90 = vperm.xlu1 %1223, %v49_v8   ;;  %87 = vperm.xlu0 %1222, %v48_v9  }
  0x19   :  { %309 = vmatpush.msra.mxu0 %v214_v29  ;;  %1195 = vmatpush.msra.mxu3 %v214_v29 }
  0x1b   :  { %310 = vmatpush.msra.mxu0 %v213_v30  ;;  %1196 = vmatpush.msra.mxu3 %v213_v30 }
  0x1d   :  { %311 = vmatpush.msra.mxu0 %v212_v31  ;;  %1197 = vmatpush.msra.mxu3 %v212_v31 }
  0x1f   :  { %96 = vperm.xlu2 %1224, %v51_v10  }
  0x20   :  { %117 = vperm.xlu1 %1223, %v58_v11   ;;  %93 = vperm.xlu0 %1222, %v50_v12  }
  0x27   :  { %123 = vperm.xlu2 %1224, %v60_v13  }
  0x28   :  { %99 = vperm.xlu1 %1223, %v52_v14   ;;  %120 = vperm.xlu0 %1222, %v59_v15   ;;  %v787_v15 = vld [vmem:[%s1988_s2 + $0x98] sm:$0xff] }
  0x29   :  { %897 = vmatpush.msra.mxu2 %v787_v15 }
  0x2f   :  { %105 = vperm.xlu2 %1224, %v54_v16   ;;  %v786_v16 = vld [vmem:[%s1988_s2 + $0x90] sm:$0xff] }
  0x30   :  { %126 = vperm.xlu1 %1223, %v61_v17   ;;  %102 = vperm.xlu0 %1222, %v53_v18   ;;  %v785_v18 = vld [vmem:[%s1988_s2 + $0x88] sm:$0xff] }
  0x31   :  { %898 = vmatpush.msra.mxu2 %v786_v16 }
  0x33   :  { %899 = vmatpush.msra.mxu2 %v785_v18 }
  0x37   :  { %132 = vperm.xlu2 %1224, %v63_v19   ;;  %v784_v19 = vld [vmem:[%s1988_s2 + $0x80] sm:$0xff] }
  0x38   :  { %108 = vperm.xlu1 %1223, %v55_v20   ;;  %129 = vperm.xlu0 %1222, %v62_v21  }
  0x39   :  { %900 = vmatpush.msra.mxu2 %v784_v19 }
  0x3f   :  { %138 = vperm.xlu2 %1224, %v65_v22  }
  0x40   :  { %135 = vperm.xlu1 %1223, %v64_v23   ;;  %111 = vperm.xlu0 %1222, %v56_v24  }
  0x61   :  { %v82_v32 = vpop.permute.xlu2 %81 }
  0x62   :  { %vm144_vm8 = vcmp.eq.s32.totalorder %v1486_v35, %v82_v32 }
  0x63   :  { %v1129_v53 = vsel %vm144_vm8, 1.0, %v1367_v37 }
  0x69   :  { %v85_v33 = vpop.permute.xlu2 %84 }
  0x6a   :  { %vm145_vm10 = vcmp.eq.s32.totalorder %v1486_v35, %v85_v33 }
  0x6b   :  { %v1130_v58 = vsel %vm145_vm10, 1.0, %v1367_v37 }
  0x71   :  { %v115_v36 = vpop.permute.xlu2 %114 }
  0x72   :  { %vm155_vm1 = vcmp.eq.s32.totalorder %v1486_v35, %v115_v36 }
  0x73   :  { %v1140_v38 = vsel %vm155_vm1, 1.0, %v1367_v37 }
  0x74   :  { %1165 = vmatmul.msk.f32.vlgmr.msra.gmra.mxu3 %vm219_vm2, %v1140_v38 }
  0x79   :  { %v97_v52 = vpop.permute.xlu2 %96 }
  0x7a   :  { %v76_v39 = vpop.permute.xlu1 %75  ;;  %v70_v40 = vpop.permute.xlu0 %69 }
  0x7b   :  { %vm140_vm3 = vcmp.eq.s32.totalorder %v1486_v35, %v70_v40  ;;  %vm142_vm5 = vcmp.eq.s32.totalorder %v1486_v35, %v76_v39 }
  0x7c   :  { %v1125_v41 = vsel %vm140_vm3, 1.0, %v1367_v37  ;;  %v1127_v46 = vsel %vm142_vm5, 1.0, %v1367_v37  ;;  %vm149_vm3 = vcmp.eq.s32.totalorder %v1486_v35, %v97_v52 }
  0x7d   :  { %1150 = vmatmul.msk.f32.vlgmr.msra.gmra.mxu0 %vm219_vm2, %v1125_v41  ;;  %v1134_v9 = vsel %vm149_vm3, 1.0, %v1367_v37  ;;  %vm1077_vm3 = vcmask 1041409  }
  0x81   :  { %v124_v57 = vpop.permute.xlu2 %123 }
  0x82   :  { %v79_v42 = vpop.permute.xlu1 %78  ;;  %v73_v43 = vpop.permute.xlu0 %72  ;;  %vm158_vm11 = vcmp.eq.s32.totalorder %v1486_v35, %v124_v57 }
  0x83   :  { %vm141_vm4 = vcmp.eq.s32.totalorder %v1486_v35, %v73_v43  ;;  %vm143_vm6 = vcmp.eq.s32.totalorder %v1486_v35, %v79_v42  ;;  %v1143_v59 = vsel %vm158_vm11, 1.0, %v1367_v37  ;;  %vm676_vm11 = vcmask 1043456  }
  0x84   :  { %v1126_v44 = vsel %vm141_vm4, 1.0, %v1367_v37  ;;  %v1128_v51 = vsel %vm143_vm6, 1.0, %v1367_v37 }
  0x85   :  { %1151 = vmatmul.msk.f32.gmra.mxu0 %vm219_vm2, %v1126_v44 }
  0x89   :  { %v106_v0 = vpop.permute.xlu2 %105 }
  0x8a   :  { %v91_v45 = vpop.permute.xlu1 %90  ;;  %v88_v47 = vpop.permute.xlu0 %87  ;;  %vm152_vm8 = vcmp.eq.s32.totalorder %v1486_v35, %v106_v0 }
  0x8b   :  { %vm146_vm12 = vcmp.eq.s32.totalorder %v1486_v35, %v88_v47  ;;  %vm147_vm14 = vcmp.eq.s32.totalorder %v1486_v35, %v91_v45  ;;  %v1137_v17 = vsel %vm152_vm8, 1.0, %v1367_v37  ;;  %vm1092_vm8 = vcmask 1046534  }
  0x8c   :  { %v1131_v62 = vsel %vm146_vm12, 1.0, %v1367_v37  ;;  %v1132_v2 = vsel %vm147_vm14, 1.0, %v1367_v37  ;;  %vm717_vm12 = vcmask 261120   ;;  %vm409_vm14 = vcmask 1046528  }
  0x8d   :  { %1152 = vmatmul.msk.f32.gmra.mxu0 %vm219_vm2, %v1127_v46 }
  0x91   :  { %v133_v5 = vpop.permute.xlu2 %132 }
  0x92   :  { %v118_v48 = vpop.permute.xlu1 %117  ;;  %v94_v49 = vpop.permute.xlu0 %93  ;;  %vm161_vm0 = vcmp.eq.s32.totalorder %v1486_v35, %v133_v5 }
  0x93   :  { %vm156_vm7 = vcmp.eq.s32.totalorder %v1486_v35, %v118_v48  ;;  %vm148_vm1 = vcmp.eq.s32.totalorder %v1486_v35, %v94_v49  ;;  %v1146_v6 = vsel %vm161_vm0, 1.0, %v1367_v37  ;;  %vm751_vm0 = vcmask 785408  }
  0x94   :  { %v1141_v50 = vsel %vm156_vm7, 1.0, %v1367_v37  ;;  %v1133_v7 = vsel %vm148_vm1, 1.0, %v1367_v37  ;;  %vm968_vm1 = vcmask 195584  }
  0x95   :  { %1166 = vmatmul.msk.f32.gmra.mxu3 %vm219_vm2, %v1141_v50  ;;  %1153 = vmatmul.msk.f32.gmra.mxu0 %vm219_vm2, %v1128_v51 }
  0x99   :  { %v139_v11 = vpop.permute.xlu2 %138 }
  0x9a   :  { %v121_v54 = vpop.permute.xlu0 %120  ;;  %v100_v55 = vpop.permute.xlu1 %99  ;;  %vm163_vm5 = vcmp.eq.s32.totalorder %v1486_v35, %v139_v11 }
  0x9b   :  { %vm157_vm9 = vcmp.eq.s32.totalorder %v1486_v35, %v121_v54  ;;  %vm150_vm6 = vcmp.eq.s32.totalorder %v1486_v35, %v100_v55  ;;  %v1148_v12 = vsel %vm163_vm5, 1.0, %v1367_v37  ;;  %vm1083_vm5 = vcmask 1043459  }
  0x9c   :  { %v1142_v56 = vsel %vm157_vm9, 1.0, %v1367_v37  ;;  %v1135_v13 = vsel %vm150_vm6, 1.0, %v1367_v37  ;;  %vm1086_vm6 = vcmask 1044484  }
  0x9d   :  { %1154 = vmatmul.msk.f32.gmra.mxu0 %vm219_vm2, %v1129_v53  ;;  %1167 = vmatmul.msk.f32.gmra.mxu3 %vm219_vm2, %v1142_v56 }
  0xa2   :  { %v103_v60 = vpop.permute.xlu0 %102  ;;  %v127_v61 = vpop.permute.xlu1 %126 }
  0xa3   :  { %vm159_vm13 = vcmp.eq.s32.totalorder %v1486_v35, %v127_v61  ;;  %vm151_vm7 = vcmp.eq.s32.totalorder %v1486_v35, %v103_v60 }
  0xa4   :  { %v1144_v63 = vsel %vm159_vm13, 1.0, %v1367_v37  ;;  %v1136_v14 = vsel %vm151_vm7, 1.0, %v1367_v37  ;;  %vm498_vm13 = vcmask 1045504   ;;  %vm1089_vm7 = vcmask 1045509  }
  0xa5   :  { %1155 = vmatmul.msk.f32.gmra.mxu0 %vm219_vm2, %v1130_v58  ;;  %1168 = vmatmul.msk.f32.gmra.mxu3 %vm219_vm2, %v1143_v59 }
  0xaa   :  { %v130_v1 = vpop.permute.xlu0 %129  ;;  %v109_v3 = vpop.permute.xlu1 %108 }
  0xab   :  { %vm160_vm15 = vcmp.eq.s32.totalorder %v1486_v35, %v130_v1  ;;  %vm153_vm9 = vcmp.eq.s32.totalorder %v1486_v35, %v109_v3 }
  0xac   :  { %v1145_v4 = vsel %vm160_vm15, 1.0, %v1367_v37  ;;  %v1138_v20 = vsel %vm153_vm9, 1.0, %v1367_v37  ;;  %vm734_vm15 = vcmask 523264   ;;  %vm1095_vm9 = vcmask 1047559  }
  0xad   :  { %1156 = vmatmul.msk.f32.gmra.mxu0 %vm219_vm2, %v1131_v62  ;;  %1169 = vmatmul.msk.f32.gmra.mxu3 %vm219_vm2, %v1144_v63 }
  0xb2   :  { %v136_v8 = vpop.permute.xlu1 %135  ;;  %v112_v21 = vpop.permute.xlu0 %111 }
  0xb3   :  { %vm162_vm4 = vcmp.eq.s32.totalorder %v1486_v35, %v136_v8  ;;  %vm154_vm10 = vcmp.eq.s32.totalorder %v1486_v35, %v112_v21 }
  0xb4   :  { %v1147_v10 = vsel %vm162_vm4, 1.0, %v1367_v37  ;;  %v1139_v22 = vsel %vm154_vm10, 1.0, %v1367_v37  ;;  %vm1080_vm4 = vcmask 1042434  }
  0xb5   :  { %1157 = vmatmul.msk.f32.gmra.mxu0 %vm219_vm2, %v1132_v2  ;;  %1170 = vmatmul.msk.f32.gmra.mxu3 %vm219_vm2, %v1145_v4 }
  0xbd   :  { %1158 = vmatmul.msk.f32.gmra.mxu0 %vm219_vm2, %v1133_v7  ;;  %1171 = vmatmul.msk.f32.gmra.mxu3 %vm219_vm2, %v1146_v6 }
  0xc5   :  { %1159 = vmatmul.msk.f32.gmra.mxu0 %vm219_vm2, %v1134_v9  ;;  %1172 = vmatmul.msk.f32.gmra.mxu3 %vm219_vm2, %v1147_v10 }
  0xcd   :  { %1160 = vmatmul.msk.f32.gmra.mxu0 %vm219_vm2, %v1135_v13  ;;  %1173 = vmatmul.msk.f32.gmra.mxu3 %vm219_vm2, %v1148_v12 }
  0xd5   :  { %1161 = vmatmul.msk.f32.gmra.mxu0 %vm219_vm2, %v1136_v14 }
  0xdd   :  { %1162 = vmatmul.msk.f32.gmra.mxu0 %vm219_vm2, %v1137_v17 }
  0xe5   :  { %1163 = vmatmul.msk.f32.gmra.mxu0 %vm219_vm2, %v1138_v20 }
  0xed   :  { %1164 = vmatmul.msk.f32.gmra.mxu0 %vm219_vm2, %v1139_v22  ;;  %vm587_vm2 = vcmask 1044480  }
  0xf7   :  { %v1624_v12 = vpop.f32.mrf.mxu3 }
  0xfa   :  { %v1572_v23 = vpop.f32.mrf.mxu0 }
  0xfb   :  { %v677_v25 = vrot.slane %v1572_v23, 4  ;;  %v410_v31 = vrot.slane %v1572_v23, 1  ;;  %v499_v32 = vrot.slane %v1572_v23, 2  ;;  %v588_v33 = vrot.slane %v1572_v23, 3 }
 0x102   :  { %v1574_v24 = vpop.f32.mrf.mxu0 }
 0x103   :  { %v678_v26 = vrot.slane %v1574_v24, 4  ;;  %v411_v28 = vrot.slane %v1574_v24, 1  ;;  %v500_v29 = vrot.slane %v1574_v24, 2  ;;  %v589_v30 = vrot.slane %v1574_v24, 3 }
 0x105   :  { %v679_v27 = vsel %vm676_vm11, %v677_v25, %v678_v26  ;;  %v590_v39 = vsel %vm587_vm2, %v588_v33, %v589_v30  ;;  %v501_v40 = vsel %vm498_vm13, %v499_v32, %v500_v29  ;;  %v412_v41 = vsel %vm409_vm14, %v410_v31, %v411_v28 }
 0x106   :  { %1174 = vmatmul.msk.f32.vlgmr.msra.gmra.mxu2 %vm717_vm12, %v679_v27 }
 0x10a   :  { %v319_v34 = vpop.f32.mrf.mxu0 }
 0x10b   :  { %v413_v35 = vrot.slane %v319_v34, 1  ;;  %v502_v36 = vrot.slane %v319_v34, 2  ;;  %v591_v37 = vrot.slane %v319_v34, 3  ;;  %v680_v38 = vrot.slane %v319_v34, 4 }
 0x10d   :  { %v681_v42 = vsel %vm676_vm11, %v678_v26, %v680_v38  ;;  %v592_v43 = vsel %vm587_vm2, %v589_v30, %v591_v37  ;;  %v503_v44 = vsel %vm498_vm13, %v500_v29, %v502_v36  ;;  %v414_v45 = vsel %vm409_vm14, %v411_v28, %v413_v35 }
 0x10e   :  { %1175 = vmatmul.msk.f32.gmra.mxu2 %vm717_vm12, %v681_v42  ;;  %v1235_v46 = vpack.i.bf16 %v592_v43, %v590_v39  ;;  %v1230_v47 = vpack.i.bf16 %v503_v44, %v501_v40  ;;  %v1225_v48 = vpack.i.bf16 %v414_v45, %v412_v41  ;;  %v783_v43 = vld [vmem:[%s1988_s2 + $0x78] sm:$0xff] }
 0x10f   :  { %820 = vmatpush.msra.mxu1 %v783_v43  ;;  %1198 = vmatpush.msrb.mxu3 %v783_v43 }
 0x110   :  { %1236 = vrot.lane.b32.xlu2 %v1235_v46, %s1368_s14  ;;  %1231 = vrot.lane.b32.xlu1 %v1230_v47, %s1369_s15 }
 0x111   :  { %1226 = vrot.lane.b32.xlu0 %v1225_v48, %s1370_s16  ;;  %v782_v48 = vld [vmem:[%s1988_s2 + $0x70] sm:$0xff] }
 0x112   :  { %v1597_v49 = vpop.f32.mrf.mxu0  ;;  %821 = vmatpush.msra.mxu1 %v782_v48  ;;  %1199 = vmatpush.msrb.mxu3 %v782_v48 }
 0x113   :  { %v682_v51 = vrot.slane %v1597_v49, 4  ;;  %v415_v57 = vrot.slane %v1597_v49, 1  ;;  %v504_v58 = vrot.slane %v1597_v49, 2  ;;  %v593_v59 = vrot.slane %v1597_v49, 3 }
 0x118   :  { %v1631_v17 = vpop.f32.mrf.mxu3 }
 0x11a   :  { %v1599_v50 = vpop.f32.mrf.mxu0 }
 0x11b   :  { %v683_v52 = vrot.slane %v1599_v50, 4  ;;  %v416_v54 = vrot.slane %v1599_v50, 1  ;;  %v505_v55 = vrot.slane %v1599_v50, 2  ;;  %v594_v56 = vrot.slane %v1599_v50, 3 }
 0x11d   :  { %v684_v53 = vsel %vm676_vm11, %v682_v51, %v683_v52  ;;  %v595_v1 = vsel %vm587_vm2, %v593_v59, %v594_v56  ;;  %v506_v2 = vsel %vm498_vm13, %v504_v58, %v505_v55  ;;  %v417_v3 = vsel %vm409_vm14, %v415_v57, %v416_v54  ;;  %v781_v51 = vld [vmem:[%s1988_s2 + $0x68] sm:$0xff]  ;;  %v779_v57 = vld [vmem:[%s1988_s2 + $0x58] sm:$0xff]  ;;  %v778_v58 = vld [vmem:[%s1988_s2 + $0x50] sm:$0xff] }
 0x11e   :  { %1176 = vmatmul.msk.f32.gmra.mxu2 %vm717_vm12, %v684_v53  ;;  %822 = vmatpush.msra.mxu1 %v781_v51  ;;  %v780_v53 = vld [vmem:[%s1988_s2 + $0x60] sm:$0xff] }
 0x11f   :  { %1200 = vmatpush.msrb.mxu3 %v781_v51 }
 0x120   :  { %v1648_v41 = vpop.f32.mrf.mxu3  ;;  %823 = vmatpush.msra.mxu1 %v780_v53 }
 0x121   :  { %1201 = vmatpush.msrb.mxu3 %v780_v53 }
 0x122   :  { %v328_v60 = vpop.f32.mrf.mxu0  ;;  %824 = vmatpush.msra.mxu1 %v779_v57 }
 0x123   :  { %v418_v61 = vrot.slane %v328_v60, 1  ;;  %v507_v62 = vrot.slane %v328_v60, 2  ;;  %v596_v63 = vrot.slane %v328_v60, 3  ;;  %v685_v0 = vrot.slane %v328_v60, 4  ;;  %1202 = vmatpush.msrb.mxu3 %v779_v57 }
 0x124   :  { %825 = vmatpush.msra.mxu1 %v778_v58 }
 0x125   :  { %v686_v4 = vsel %vm676_vm11, %v683_v52, %v685_v0  ;;  %v597_v5 = vsel %vm587_vm2, %v594_v56, %v596_v63  ;;  %v508_v6 = vsel %vm498_vm13, %v505_v55, %v507_v62  ;;  %v419_v7 = vsel %vm409_vm14, %v416_v54, %v418_v61  ;;  %1203 = vmatpush.msrb.mxu3 %v778_v58 }
 0x126   :  { %1177 = vmatmul.msk.f32.gmra.mxu2 %vm717_vm12, %v686_v4  ;;  %v1250_v8 = vpack.i.bf16 %v597_v5, %v595_v1  ;;  %v1245_v9 = vpack.i.bf16 %v508_v6, %v506_v2  ;;  %v1240_v10 = vpack.i.bf16 %v419_v7, %v417_v3  ;;  %v777_v3 = vld [vmem:[%s1988_s2 + $0x48] sm:$0xff] }
 0x127   :  { %826 = vmatpush.msra.mxu1 %v777_v3  ;;  %1204 = vmatpush.msrb.mxu3 %v777_v3  ;;  %v524_v3 = vrot.slane %v1624_v12, 2 }
 0x128   :  { %1251 = vrot.lane.b32.xlu2 %v1250_v8, %s1368_s14  ;;  %1246 = vrot.lane.b32.xlu1 %v1245_v9, %s1369_s15  ;;  %v1658_v44 = vpop.f32.mrf.mxu3 }
 0x129   :  { %1241 = vrot.lane.b32.xlu0 %v1240_v10, %s1370_s16 }
 0x12a   :  { %v1622_v11 = vpop.f32.mrf.mxu0 }
 0x12b   :  { %v687_v14 = vrot.slane %v1622_v11, 4  ;;  %v420_v21 = vrot.slane %v1622_v11, 1  ;;  %v509_v22 = vrot.slane %v1622_v11, 2  ;;  %v598_v25 = vrot.slane %v1622_v11, 3 }
 0x130   :  { %v1690_v4 = vpop.f32.mrf.mxu3 }
 0x132   :  { %v1626_v13 = vpop.f32.mrf.mxu0 }
 0x133   :  { %v688_v15 = vrot.slane %v1626_v13, 4  ;;  %v421_v18 = vrot.slane %v1626_v13, 1  ;;  %v510_v19 = vrot.slane %v1626_v13, 2  ;;  %v599_v20 = vrot.slane %v1626_v13, 3 }
 0x135   :  { %v689_v16 = vsel %vm676_vm11, %v687_v14, %v688_v15  ;;  %v600_v31 = vsel %vm587_vm2, %v598_v25, %v599_v20  ;;  %v511_v32 = vsel %vm498_vm13, %v509_v22, %v510_v19  ;;  %v422_v33 = vsel %vm409_vm14, %v420_v21, %v421_v18  ;;  %v774_v22 = vld [vmem:[%s1988_s2 + $0x30] sm:$0xff]  ;;  %v773_v25 = vld [vmem:[%s1988_s2 + $0x28] sm:$0xff] }
 0x136   :  { %1178 = vmatmul.msk.f32.gmra.mxu2 %vm717_vm12, %v689_v16 }
 0x13a   :  { %v337_v26 = vpop.f32.mrf.mxu0 }
 0x13b   :  { %v423_v27 = vrot.slane %v337_v26, 1  ;;  %v512_v28 = vrot.slane %v337_v26, 2  ;;  %v601_v29 = vrot.slane %v337_v26, 3  ;;  %v690_v30 = vrot.slane %v337_v26, 4  ;;  %v1717_v26 = vpop.f32.mrf.mxu3 }
 0x13d   :  { %v691_v34 = vsel %vm676_vm11, %v688_v15, %v690_v30  ;;  %v602_v35 = vsel %vm587_vm2, %v599_v20, %v601_v29  ;;  %v513_v36 = vsel %vm498_vm13, %v510_v19, %v512_v28  ;;  %v424_v37 = vsel %vm409_vm14, %v421_v18, %v423_v27  ;;  %v776_v19 = vld [vmem:[%s1988_s2 + $0x40] sm:$0xff]  ;;  %v775_v20 = vld [vmem:[%s1988_s2 + $0x38] sm:$0xff] }
 0x13e   :  { %1179 = vmatmul.msk.f32.gmra.mxu2 %vm717_vm12, %v691_v34  ;;  %v1265_v38 = vpack.i.bf16 %v602_v35, %v600_v31  ;;  %v1260_v39 = vpack.i.bf16 %v513_v36, %v511_v32  ;;  %v1255_v40 = vpack.i.bf16 %v424_v37, %v422_v33  ;;  %827 = vmatpush.msra.mxu1 %v776_v19  ;;  %v772_v27 = vld [vmem:[%s1988_s2 + $0x20] sm:$0xff]  ;;  %v771_v28 = vld [vmem:[%s1988_s2 + $0x18] sm:$0xff]  ;;  %v770_v32 = vld [vmem:[%s1988_s2 + $0x10] sm:$0xff] }
 0x13f   :  { %1205 = vmatpush.msrb.mxu3 %v776_v19  ;;  %v769_v33 = vld [vmem:[%s1988_s2 + $0x8] sm:$0xff]  ;;  %v768_v35 = vld [vmem:[%s1988_s2] sm:$0xff]  ;;  %v703_v19 = vrot.slane %v1631_v17, 4 }
 0x140   :  { %1266 = vrot.lane.b32.xlu2 %v1265_v38, %s1368_s14  ;;  %1261 = vrot.lane.b32.xlu1 %v1260_v39, %s1369_s15 }
 0x141   :  { %1256 = vrot.lane.b32.xlu0 %v1255_v40, %s1370_s16  ;;  %828 = vmatpush.msra.mxu1 %v775_v20 }
 0x142   :  { %v1653_v42 = vpop.f32.mrf.mxu0  ;;  %1206 = vmatpush.msrb.mxu3 %v775_v20 }
 0x143   :  { %v692_v46 = vrot.slane %v1653_v42, 4  ;;  %v425_v59 = vrot.slane %v1653_v42, 1  ;;  %v514_v60 = vrot.slane %v1653_v42, 2  ;;  %v603_v61 = vrot.slane %v1653_v42, 3  ;;  %829 = vmatpush.msra.mxu1 %v774_v22  ;;  %v1740_v36 = vpop.f32.mrf.mxu3 }
 0x144   :  { %1207 = vmatpush.msrb.mxu3 %v774_v22 }
 0x145   :  { %830 = vmatpush.msra.mxu1 %v773_v25 }
 0x146   :  { %1208 = vmatpush.msrb.mxu3 %v773_v25 }
 0x147   :  { %831 = vmatpush.msra.mxu1 %v772_v27 }
 0x148   :  { %1209 = vmatpush.msrb.mxu3 %v772_v27 }
 0x149   :  { %832 = vmatpush.msra.mxu1 %v771_v28 }
 0x14a   :  { %v1660_v45 = vpop.f32.mrf.mxu0  ;;  %1210 = vmatpush.msrb.mxu3 %v771_v28 }
 0x14b   :  { %v693_v47 = vrot.slane %v1660_v45, 4  ;;  %v426_v54 = vrot.slane %v1660_v45, 1  ;;  %v515_v55 = vrot.slane %v1660_v45, 2  ;;  %v604_v56 = vrot.slane %v1660_v45, 3  ;;  %833 = vmatpush.msra.mxu1 %v770_v32 }
 0x14c   :  { %1211 = vmatpush.msrb.mxu3 %v770_v32 }
 0x14d   :  { %v694_v52 = vsel %vm676_vm11, %v692_v46, %v693_v47  ;;  %v605_v5 = vsel %vm587_vm2, %v603_v61, %v604_v56  ;;  %v516_v6 = vsel %vm498_vm13, %v514_v60, %v515_v55  ;;  %v427_v7 = vsel %vm409_vm14, %v425_v59, %v426_v54  ;;  %834 = vmatpush.msra.mxu1 %v769_v33 }
 0x14e   :  { %1180 = vmatmul.msk.f32.gmra.mxu2 %vm717_vm12, %v694_v52  ;;  %1212 = vmatpush.msrb.mxu3 %v769_v33 }
 0x14f   :  { %835 = vmatpush.msra.mxu1 %v768_v35 }
 0x150   :  { %1213 = vmatpush.msrb.mxu3 %v768_v35 }
 0x152   :  { %v346_v62 = vpop.f32.mrf.mxu0 }
 0x153   :  { %v428_v63 = vrot.slane %v346_v62, 1  ;;  %v517_v0 = vrot.slane %v346_v62, 2  ;;  %v606_v1 = vrot.slane %v346_v62, 3  ;;  %v695_v2 = vrot.slane %v346_v62, 4 }
 0x155   :  { %v696_v8 = vsel %vm676_vm11, %v693_v47, %v695_v2  ;;  %v607_v9 = vsel %vm587_vm2, %v604_v56, %v606_v1  ;;  %v518_v10 = vsel %vm498_vm13, %v515_v55, %v517_v0  ;;  %v429_v14 = vsel %vm409_vm14, %v426_v54, %v428_v63 }
 0x156   :  { %1181 = vmatmul.msk.f32.gmra.mxu2 %vm717_vm12, %v696_v8  ;;  %v1280_v15 = vpack.i.bf16 %v607_v9, %v605_v5  ;;  %v1275_v16 = vpack.i.bf16 %v518_v10, %v516_v6  ;;  %v1270_v18 = vpack.i.bf16 %v429_v14, %v427_v7  ;;  %v443_v63 = vrot.slane %v1717_v26, 1 }
 0x157   :  { %v532_v0 = vrot.slane %v1717_v26, 2  ;;  %v435_v2 = vrot.slane %v1624_v12, 1  ;;  %v613_v5 = vrot.slane %v1624_v12, 3  ;;  %v621_v6 = vrot.slane %v1717_v26, 3 }
 0x158   :  { %1281 = vrot.lane.b32.xlu2 %v1280_v15, %s1368_s14  ;;  %1276 = vrot.lane.b32.xlu1 %v1275_v16, %s1369_s15  ;;  %v436_v7 = vrot.slane %v1631_v17, 1  ;;  %v525_v8 = vrot.slane %v1631_v17, 2  ;;  %v441_v9 = vrot.slane %v1690_v4, 1  ;;  %v530_v10 = vrot.slane %v1690_v4, 2  ;;  %v1771_v16 = vpop.f32.mrf.mxu3 }
 0x159   :  { %1271 = vrot.lane.b32.xlu0 %v1270_v18, %s1370_s16  ;;  %v614_v14 = vrot.slane %v1631_v17, 3  ;;  %v619_v15 = vrot.slane %v1690_v4, 3  ;;  %v702_v18 = vrot.slane %v1624_v12, 4  ;;  %v535_v35 = vrot.slane %v1771_v16, 2 }
 0x15a   :  { %v1709_v21 = vpop.f32.mrf.mxu0  ;;  %v533_v20 = vsel %vm498_vm13, %v530_v10, %v532_v0  ;;  %v444_v22 = vsel %vm409_vm14, %v441_v9, %v443_v63  ;;  %v526_v27 = vsel %vm498_vm13, %v524_v3, %v525_v8  ;;  %v437_v28 = vsel %vm409_vm14, %v435_v2, %v436_v7 }
 0x15b   :  { %v697_v30 = vrot.slane %v1709_v21, 4  ;;  %v608_v40 = vrot.slane %v1709_v21, 3  ;;  %v430_v46 = vrot.slane %v1709_v21, 1  ;;  %v519_v47 = vrot.slane %v1709_v21, 2 }
 0x15c   :  { %v622_v25 = vsel %vm587_vm2, %v619_v15, %v621_v6  ;;  %v1305_v32 = vpack.i.bf16 %v526_v27, %v533_v20  ;;  %v1300_v33 = vpack.i.bf16 %v437_v28, %v444_v22  ;;  %v708_v63 = vrot.slane %v1690_v4, 4 }
 0x15d   :  { %v440_v0 = vrot.slane %v1658_v44, 1 }
 0x15f   :  { %v442_v20 = vsel %vm409_vm14, %v440_v0, %v441_v9 }
 0x162   :  { %v1725_v29 = vpop.f32.mrf.mxu0 }
 0x163   :  { %v698_v31 = vrot.slane %v1725_v29, 4  ;;  %v609_v37 = vrot.slane %v1725_v29, 3  ;;  %v431_v38 = vrot.slane %v1725_v29, 1  ;;  %v520_v39 = vrot.slane %v1725_v29, 2 }
 0x165   :  { %v699_v34 = vsel %vm676_vm11, %v697_v30, %v698_v31  ;;  %v610_v54 = vsel %vm587_vm2, %v608_v40, %v609_v37  ;;  %v521_v55 = vsel %vm498_vm13, %v519_v47, %v520_v39  ;;  %v432_v57 = vsel %vm409_vm14, %v430_v46, %v431_v38 }
 0x166   :  { %1182 = vmatmul.msk.f32.gmra.mxu2 %vm717_vm12, %v699_v34  ;;  %v704_v30 = vsel %vm676_vm11, %v702_v18, %v703_v19  ;;  %v446_v34 = vrot.slane %v1771_v16, 1  ;;  %v527_v40 = vrot.slane %v1648_v41, 2  ;;  %v534_v46 = vrot.slane %v1740_v36, 2 }
 0x167   :  { %v616_v47 = vrot.slane %v1648_v41, 3 }
 0x16a   :  { %v355_v43 = vpop.f32.mrf.mxu0  ;;  %v1237_v3 = vpop.permute.xlu2 %1236 }
 0x16b   :  { %v433_v48 = vrot.slane %v355_v43, 1  ;;  %v522_v51 = vrot.slane %v355_v43, 2  ;;  %v611_v52 = vrot.slane %v355_v43, 3  ;;  %v700_v53 = vrot.slane %v355_v43, 4 }
 0x16c   :  { %v445_v43 = vrot.slane %v1740_v36, 1  ;;  %v1238_v22 = vunpack.i.l.bf16 %v1237_v3 }
 0x16d   :  { %v523_v56 = vsel %vm498_vm13, %v520_v39, %v522_v51  ;;  %v434_v58 = vsel %vm409_vm14, %v431_v38, %v433_v48  ;;  %v701_v59 = vsel %vm676_vm11, %v698_v31, %v700_v53  ;;  %v612_v60 = vsel %vm587_vm2, %v609_v37, %v611_v52 }
 0x16e   :  { %v1290_v61 = vpack.i.bf16 %v523_v56, %v521_v55  ;;  %v1285_v62 = vpack.i.bf16 %v434_v58, %v432_v57  ;;  %1183 = vmatmul.msk.f32.gmra.mxu2 %vm717_vm12, %v701_v59  ;;  %v1295_v1 = vpack.i.bf16 %v612_v60, %v610_v54  ;;  %v615_v31 = vsel %vm587_vm2, %v613_v5, %v614_v14  ;;  %v1802_v54 = vpop.f32.mrf.mxu3 }
 0x16f   :  { %v1310_v37 = vpack.i.bf16 %v615_v31, %v622_v25  ;;  %v624_v38 = vrot.slane %v1771_v16, 3  ;;  %v438_v39 = vrot.slane %v1648_v41, 1  ;;  %v705_v48 = vrot.slane %v1648_v41, 4 }
 0x170   :  { %1291 = vrot.lane.b32.xlu1 %v1290_v61, %s1369_s15  ;;  %1286 = vrot.lane.b32.xlu0 %v1285_v62, %s1370_s16  ;;  %v623_v51 = vrot.slane %v1740_v36, 3  ;;  %v536_v52 = vsel %vm498_vm13, %v534_v46, %v535_v35  ;;  %v447_v53 = vsel %vm409_vm14, %v445_v43, %v446_v34  ;;  %v528_v56 = vsel %vm498_vm13, %v525_v8, %v527_v40 }
 0x171   :  { %1296 = vrot.lane.b32.xlu2 %v1295_v1, %s1368_s14  ;;  %v439_v57 = vsel %vm409_vm14, %v436_v7, %v438_v39  ;;  %v706_v58 = vsel %vm676_vm11, %v703_v19, %v705_v48  ;;  %v617_v59 = vsel %vm587_vm2, %v614_v14, %v616_v47  ;;  %v1320_v60 = vpack.i.bf16 %v528_v56, %v536_v52 }
 0x172   :  { %v625_v55 = vsel %vm587_vm2, %v623_v51, %v624_v38  ;;  %v1315_v41 = vpack.i.bf16 %v439_v57, %v447_v53  ;;  %v448_v61 = vrot.slane %v1802_v54, 1  ;;  %v537_v2 = vrot.slane %v1802_v54, 2 }
 0x173   :  { %v1325_v62 = vpack.i.bf16 %v617_v59, %v625_v55  ;;  %v707_v7 = vrot.slane %v1658_v44, 4  ;;  %v626_v14 = vrot.slane %v1802_v54, 3  ;;  %v1239_v39 = vunpack.i.h.bf16 %v1237_v3 }
 0x174   :  { %v449_v8 = vsel %vm409_vm14, %v446_v34, %v448_v61  ;;  %v713_v46 = vrot.slane %v1771_v16, 4  ;;  %v712_v47 = vrot.slane %v1740_v36, 4 }
 0x175   :  { %v709_v19 = vsel %vm676_vm11, %v707_v7, %v708_v63  ;;  %v1330_v27 = vpack.i.bf16 %v442_v20, %v449_v8 }
 0x176   :  { %1184 = vmatmul.msk.f32.gmra.mxu2 %vm717_vm12, %v704_v30  ;;  %v538_v30 = vsel %vm498_vm13, %v535_v35, %v537_v2  ;;  %v618_v35 = vrot.slane %v1658_v44, 3  ;;  %v714_v48 = vsel %vm676_vm11, %v712_v47, %v713_v46 }
 0x178   :  { %1306 = vrot.lane.b32.xlu1 %v1305_v32, %s1369_s15  ;;  %1301 = vrot.lane.b32.xlu0 %v1300_v33, %s1370_s16  ;;  %v627_v32 = vsel %vm587_vm2, %v624_v38, %v626_v14  ;;  %v620_v43 = vsel %vm587_vm2, %v618_v35, %v619_v15  ;;  %v715_v15 = vrot.slane %v1802_v54, 4 }
 0x179   :  { %1311 = vrot.lane.b32.xlu2 %v1310_v37, %s1368_s14  ;;  %v529_v37 = vrot.slane %v1658_v44, 2 }
 0x17e   :  { %1185 = vmatmul.msk.f32.gmra.mxu2 %vm717_vm12, %v706_v58  ;;  %v716_v58 = vsel %vm676_vm11, %v713_v46, %v715_v15 }
 0x180   :  { %1321 = vrot.lane.b32.xlu1 %v1320_v60, %s1369_s15  ;;  %1316 = vrot.lane.b32.xlu0 %v1315_v41, %s1370_s16 }
 0x181   :  { %1326 = vrot.lane.b32.xlu2 %v1325_v62, %s1368_s14 }
 0x182   :  { %v1232_v1 = vpop.permute.xlu1 %1231  ;;  %v1252_v52 = vpop.permute.xlu2 %1251 }
 0x183   :  { %v1233_v5 = vunpack.i.l.bf16 %v1232_v1  ;;  %v1227_v6 = vpop.permute.xlu0 %1226  ;;  %v1234_v33 = vunpack.i.h.bf16 %v1232_v1  ;;  %v1253_v56 = vunpack.i.l.bf16 %v1252_v52 }
 0x184   :  { %v1228_v18 = vunpack.i.l.bf16 %v1227_v6  ;;  %v1229_v25 = vunpack.i.h.bf16 %v1227_v6 }
 0x186   :  { %v718_v28 = vsel %vm717_vm12, %v1572_v23, %v1228_v18  ;;  %1186 = vmatmul.msk.f32.gmra.mxu2 %vm717_vm12, %v709_v19  ;;  %v710_v23 = vrot.slane %v1717_v26, 4  ;;  %v719_v34 = vsel %vm717_vm12, %v1574_v24, %v1229_v25  ;;  %v531_v26 = vsel %vm498_vm13, %v529_v37, %v530_v10 }
 0x187   :  { %v735_v31 = vsel %vm734_vm15, %v718_v28, %v1233_v5  ;;  %v736_v38 = vsel %vm734_vm15, %v719_v34, %v1234_v33 }
 0x188   :  { %569 = vrot.lane.b32.xlu1 %v538_v30, %s1369_s15  ;;  %1331 = vrot.lane.b32.xlu0 %v1330_v27, %s1370_s16  ;;  %v752_v9 = vsel %vm751_vm0, %v735_v31, %v1238_v22  ;;  %v711_v40 = vsel %vm676_vm11, %v708_v63, %v710_v23  ;;  %v753_v24 = vsel %vm751_vm0, %v736_v38, %v1239_v39  ;;  %v1254_v63 = vunpack.i.h.bf16 %v1252_v52 }
 0x189   :  { %658 = vrot.lane.b32.xlu2 %v627_v32, %s1368_s14  ;;  %836 = vmatmul.f32.vlgmr.msra.gmra.mxu1 %v752_v9 }
 0x18e   :  { %1187 = vmatmul.msk.f32.gmra.mxu2 %vm717_vm12, %v711_v40 }
 0x190   :  { %652 = vrot.lane.b32.xlu1 %v620_v43, %s1368_s14  ;;  %563 = vrot.lane.b32.xlu0 %v531_v26, %s1369_s15 }
 0x191   :  { %839 = vmatmul.f32.gmra.mxu1 %v753_v24 }
 0x196   :  { %1188 = vmatmul.msk.f32.gmra.mxu2 %vm717_vm12, %v714_v48 }
 0x19a   :  { %v1247_v51 = vpop.permute.xlu1 %1246  ;;  %v1267_v2 = vpop.permute.xlu2 %1266 }
 0x19b   :  { %v1248_v10 = vunpack.i.l.bf16 %v1247_v51  ;;  %v1242_v53 = vpop.permute.xlu0 %1241  ;;  %v1249_v61 = vunpack.i.h.bf16 %v1247_v51  ;;  %v1268_v6 = vunpack.i.l.bf16 %v1267_v2  ;;  %v1269_v22 = vunpack.i.h.bf16 %v1267_v2 }
 0x19c   :  { %v1243_v55 = vunpack.i.l.bf16 %v1242_v53  ;;  %v1244_v57 = vunpack.i.h.bf16 %v1242_v53 }
 0x19e   :  { %v720_v59 = vsel %vm717_vm12, %v1597_v49, %v1243_v55  ;;  %1189 = vmatmul.msk.f32.gmra.mxu2 %vm717_vm12, %v716_v58  ;;  %v721_v54 = vsel %vm717_vm12, %v1599_v50, %v1244_v57 }
 0x19f   :  { %v737_v60 = vsel %vm734_vm15, %v720_v59, %v1248_v10  ;;  %v738_v62 = vsel %vm734_vm15, %v721_v54, %v1249_v61 }
 0x1a0   :  { %v754_v41 = vsel %vm751_vm0, %v737_v60, %v1253_v56  ;;  %v755_v0 = vsel %vm751_vm0, %v738_v62, %v1254_v63 }
 0x1a1   :  { %842 = vmatmul.f32.gmra.mxu1 %v754_v41 }
 0x1a9   :  { %845 = vmatmul.f32.gmra.mxu1 %v755_v0 }
 0x1b2   :  { %v1262_v1 = vpop.permute.xlu1 %1261  ;;  %v1282_v28 = vpop.permute.xlu2 %1281 }
 0x1b3   :  { %v1263_v49 = vunpack.i.l.bf16 %v1262_v1  ;;  %v1257_v3 = vpop.permute.xlu0 %1256  ;;  %v1264_v18 = vunpack.i.h.bf16 %v1262_v1  ;;  %v1283_v32 = vunpack.i.l.bf16 %v1282_v28  ;;  %v1284_v38 = vunpack.i.h.bf16 %v1282_v28 }
 0x1b4   :  { %v1258_v5 = vunpack.i.l.bf16 %v1257_v3  ;;  %v1259_v7 = vunpack.i.h.bf16 %v1257_v3 }
 0x1b6   :  { %v722_v8 = vsel %vm717_vm12, %v1622_v11, %v1258_v5  ;;  %v723_v19 = vsel %vm717_vm12, %v1626_v13, %v1259_v7  ;;  %v902_v7 = vpop.f32.mrf.mxu2 }
 0x1b7   :  { %v739_v14 = vsel %vm734_vm15, %v722_v8, %v1263_v49  ;;  %v740_v20 = vsel %vm734_vm15, %v723_v19, %v1264_v18 }
 0x1b8   :  { %v756_v50 = vsel %vm751_vm0, %v739_v14, %v1268_v6  ;;  %v757_v25 = vsel %vm751_vm0, %v740_v20, %v1269_v22 }
 0x1b9   :  { %848 = vmatmul.f32.gmra.mxu1 %v756_v50 }
 0x1c1   :  { %851 = vmatmul.f32.gmra.mxu1 %v757_v25 }
 0x1ca   :  { %v1277_v27 = vpop.permute.xlu1 %1276 }
 0x1cb   :  { %v1278_v30 = vunpack.i.l.bf16 %v1277_v27  ;;  %v1272_v31 = vpop.permute.xlu0 %1271  ;;  %v1279_v34 = vunpack.i.h.bf16 %v1277_v27  ;;  %v1297_v40 = vpop.permute.xlu2 %1296 }
 0x1cc   :  { %v1273_v11 = vunpack.i.l.bf16 %v1272_v31  ;;  %v1274_v9 = vunpack.i.h.bf16 %v1272_v31  ;;  %v1298_v46 = vunpack.i.l.bf16 %v1297_v40  ;;  %v1299_v59 = vunpack.i.h.bf16 %v1297_v40  ;;  %v1915_v40 = vld [vmem:[%s1992_s6] sm:$0xff] }
 0x1ce   :  { %v724_v33 = vsel %vm717_vm12, %v1653_v42, %v1273_v11  ;;  %v725_v35 = vsel %vm717_vm12, %v1660_v45, %v1274_v9 }
 0x1cf   :  { %v741_v23 = vsel %vm734_vm15, %v724_v33, %v1278_v30  ;;  %v742_v37 = vsel %vm734_vm15, %v725_v35, %v1279_v34  ;;  %v905_v33 = vpop.f32.mrf.mxu2 }
 0x1d0   :  { %v758_v13 = vsel %vm751_vm0, %v741_v23, %v1283_v32  ;;  %v759_v39 = vsel %vm751_vm0, %v742_v37, %v1284_v38 }
 0x1d1   :  { %854 = vmatmul.f32.gmra.mxu1 %v758_v13 }
 0x1d3   :  { %v1312_v52 = vpop.permute.xlu2 %1311 }
 0x1d4   :  { %v1313_v60 = vunpack.i.l.bf16 %v1312_v52 }
 0x1d7   :  { %v908_v38 = vpop.f32.mrf.mxu2 }
 0x1d9   :  { %857 = vmatmul.f32.gmra.mxu1 %v759_v39 }
 0x1db   :  { %v1327_v1 = vpop.permute.xlu2 %1326 }
 0x1dc   :  { %v1328_v8 = vunpack.i.l.bf16 %v1327_v1  ;;  %v1329_v30 = vunpack.i.h.bf16 %v1327_v1 }
 0x1e2   :  { %v1292_v43 = vpop.permute.xlu1 %1291  ;;  %v1287_v26 = vpop.permute.xlu0 %1286 }
 0x1e3   :  { %v1293_v24 = vunpack.i.l.bf16 %v1292_v43  ;;  %v1288_v42 = vunpack.i.l.bf16 %v1287_v26  ;;  %v1289_v47 = vunpack.i.h.bf16 %v1287_v26  ;;  %v1294_v51 = vunpack.i.h.bf16 %v1292_v43  ;;  %v659_v31 = vpop.permute.xlu2 %658  ;;  %v1920_v26 = vld [vmem:[%s1992_s6 + $0x8] sm:$0xff] }
 0x1e5   :  { %v726_v48 = vsel %vm717_vm12, %v1709_v21, %v1288_v42  ;;  %v727_v10 = vsel %vm717_vm12, %v1725_v29, %v1289_v47 }
 0x1e6   :  { %v743_v15 = vsel %vm734_vm15, %v726_v48, %v1293_v24  ;;  %v744_v58 = vsel %vm734_vm15, %v727_v10, %v1294_v51 }
 0x1e7   :  { %v760_v45 = vsel %vm751_vm0, %v743_v15, %v1298_v46  ;;  %v761_v54 = vsel %vm751_vm0, %v744_v58, %v1299_v59  ;;  %v911_v46 = vpop.f32.mrf.mxu2 }
 0x1e8   :  { %860 = vmatmul.f32.gmra.mxu1 %v760_v45 }
 0x1ea   :  { %v1307_v53 = vpop.permute.xlu1 %1306  ;;  %v1302_v55 = vpop.permute.xlu0 %1301 }
 0x1eb   :  { %v1308_v56 = vunpack.i.l.bf16 %v1307_v53  ;;  %v1303_v57 = vunpack.i.l.bf16 %v1302_v55  ;;  %v1304_v41 = vunpack.i.h.bf16 %v1302_v55  ;;  %v1309_v63 = vunpack.i.h.bf16 %v1307_v53 }
 0x1ed   :  { %v731_v21 = vsel %vm717_vm12, %v1690_v4, %v1303_v57  ;;  %v728_v29 = vsel %vm717_vm12, %v1624_v12, %v1304_v41  ;;  %v1314_v4 = vunpack.i.h.bf16 %v1312_v52 }
 0x1ee   :  { %v748_v61 = vsel %vm734_vm15, %v731_v21, %v1308_v56  ;;  %v745_v5 = vsel %vm734_vm15, %v728_v29, %v1309_v63 }
 0x1ef   :  { %v765_v62 = vsel %vm751_vm0, %v748_v61, %v1313_v60  ;;  %v762_v50 = vsel %vm751_vm0, %v745_v5, %v1314_v4  ;;  %v914_v45 = vpop.f32.mrf.mxu2  ;;  %v1933_v5 = vld [vmem:[%s1989_s3] ss:$0 sm:$0xff] }
 0x1f0   :  { %863 = vmatmul.f32.gmra.mxu1 %v761_v54  ;;  %875 = vmatmul.f32.vlgmr.msrb.gmra.mxu3 %v765_v62 }
 0x1f2   :  { %v1322_v0 = vpop.permute.xlu1 %1321  ;;  %v1317_v49 = vpop.permute.xlu0 %1316 }
 0x1f3   :  { %v1323_v2 = vunpack.i.l.bf16 %v1322_v0  ;;  %v1318_v3 = vunpack.i.l.bf16 %v1317_v49  ;;  %v1319_v6 = vunpack.i.h.bf16 %v1317_v49  ;;  %v1324_v19 = vunpack.i.h.bf16 %v1322_v0 }
 0x1f5   :  { %v732_v14 = vsel %vm717_vm12, %v1740_v36, %v1318_v3  ;;  %v729_v20 = vsel %vm717_vm12, %v1631_v17, %v1319_v6 }
 0x1f6   :  { %v749_v18 = vsel %vm734_vm15, %v732_v14, %v1323_v2  ;;  %v746_v28 = vsel %vm734_vm15, %v729_v20, %v1324_v19 }
 0x1f7   :  { %v766_v12 = vsel %vm751_vm0, %v749_v18, %v1328_v8  ;;  %v763_v32 = vsel %vm751_vm0, %v746_v28, %v1329_v30  ;;  %v917_v53 = vpop.f32.mrf.mxu2 }
 0x1f8   :  { %866 = vmatmul.f32.gmra.mxu1 %v762_v50  ;;  %878 = vmatmul.f32.gmra.mxu3 %v766_v12 }
 0x1fa   :  { %v570_v22 = vpop.permute.xlu1 %569  ;;  %v1332_v25 = vpop.permute.xlu0 %1331 }
 0x1fb   :  { %v1333_v27 = vunpack.i.l.bf16 %v1332_v25  ;;  %v1334_v11 = vunpack.i.h.bf16 %v1332_v25 }
 0x1fd   :  { %v733_v36 = vsel %vm717_vm12, %v1771_v16, %v1333_v27  ;;  %v730_v13 = vsel %vm717_vm12, %v1658_v44, %v1334_v11 }
 0x1fe   :  { %v750_v9 = vsel %vm734_vm15, %v733_v36, %v570_v22 }
 0x1ff   :  { %v767_v23 = vsel %vm751_vm0, %v750_v9, %v659_v31  ;;  %v920_v61 = vpop.f32.mrf.mxu2 }
 0x200   :  { %869 = vmatmul.f32.gmra.mxu1 %v763_v32  ;;  %881 = vmatmul.f32.gmra.mxu3 %v767_v23 }
 0x202   :  { %v564_v17 = vpop.permute.xlu0 %563  ;;  %v653_v34 = vpop.permute.xlu1 %652 }
 0x203   :  { %v747_v35 = vsel %vm734_vm15, %v730_v13, %v564_v17 }
 0x204   :  { %v764_v16 = vsel %vm751_vm0, %v747_v35, %v653_v34 }
 0x206   :  { %v837_v37 = vpop.f32.mrf.mxu1 }
 0x207   :  { %v903_v39 = vadd.f32 %v902_v7, %v837_v37  ;;  %v923_v49 = vpop.f32.mrf.mxu2 }
 0x208   :  { %872 = vmatmul.f32.gmra.mxu1 %v764_v16 }
 0x209   :  { %v952_v44 = vadd.f32 %v1915_v40, %v903_v39 }
 0x20b   :  { %v969_v47 = vsel %vm968_vm1, %v952_v44, -inf }
 0x20e   :  { %v840_v43 = vpop.f32.mrf.mxu1 }
 0x20f   :  { %v906_v24 = vadd.f32 %v905_v33, %v840_v43  ;;  %v926_v18 = vpop.f32.mrf.mxu2 }
 0x211   :  { %v953_v42 = vadd.f32 %v1920_v26, %v906_v24 }
 0x213   :  { %v970_v48 = vsel %vm968_vm1, %v953_v42, -inf }
 0x214   :  { %v971_v15 = vmax.f32 %v969_v47, %v970_v48 }
 0x216   :  { %v972_v52 = vrot.slane %v971_v15, 4 }
 0x217   :  { %v929_v32 = vpop.f32.mrf.mxu2 }
 0x218   :  { %v973_v55 = vmax.f32 %v971_v15, %v972_v52 }
 0x21a   :  { %v974_v60 = vrot.slane %v973_v55, 2 }
 0x21c   :  { %v975_v62 = vmax.f32 %v973_v55, %v974_v60 }
 0x21e   :  { %v843_v51 = vpop.f32.mrf.mxu1  ;;  %v976_v0 = vrot.slane %v975_v62, 1 }
 0x21f   :  { %v909_v10 = vadd.f32 %v908_v38, %v843_v51  ;;  %v932_v17 = vpop.f32.mrf.mxu2 }
 0x220   :  { %v977_v3 = vmax.f32 %v975_v62, %v976_v0 }
 0x221   :  { %v954_v57 = vadd.f32 %v1915_v40, %v909_v10 }
 0x222   :  { %v1045_v8 = vadd.f32 %v1933_v5, %v977_v3 }
 0x223   :  { %v978_v41 = vsel %vm968_vm1, %v954_v57, -inf }
 0x224   :  { %v1053_v19 = vmax.f32 %v1045_v8, 0.0  ;;  %v1062_v8 = vld [vmem:[%s1990_s4 + $0x8] sm:$0xff] }
 0x226   :  { %v846_v56 = vpop.f32.mrf.mxu1 }
 0x227   :  { %v912_v58 = vadd.f32 %v911_v46, %v846_v56  ;;  %v935_v42 = vpop.f32.mrf.mxu2 }
 0x229   :  { %v955_v59 = vadd.f32 %v1920_v26, %v912_v58 }
 0x22b   :  { %v979_v21 = vsel %vm968_vm1, %v955_v59, -inf }
 0x22c   :  { %v980_v54 = vmax.f32 %v978_v41, %v979_v21 }
 0x22e   :  { %v981_v63 = vrot.slane %v980_v54, 4 }
 0x230   :  { %v982_v29 = vmax.f32 %v980_v54, %v981_v63 }
 0x232   :  { %v983_v1 = vrot.slane %v982_v29, 2 }
 0x234   :  { %v984_v2 = vmax.f32 %v982_v29, %v983_v1 }
 0x236   :  { %v985_v4 = vrot.slane %v984_v2, 1  ;;  %v849_v6 = vpop.f32.mrf.mxu1 }
 0x237   :  { %v915_v20 = vadd.f32 %v914_v45, %v849_v6 }
 0x238   :  { %v986_v7 = vmax.f32 %v984_v2, %v985_v4 }
 0x239   :  { %v956_v30 = vadd.f32 %v1915_v40, %v915_v20 }
 0x23a   :  { %v1046_v14 = vadd.f32 %v1933_v5, %v986_v7  ;;  %v1063_v7 = vld [vmem:[%s1990_s4 + $0x10] sm:$0xff] }
 0x23b   :  { %v987_v31 = vsel %vm968_vm1, %v956_v30, -inf  ;;  %1112 = vmatpush.msra.mxu3 %v1063_v7 }
 0x23c   :  { %v1054_v50 = vmax.f32 %v1046_v14, 0.0 }
 0x23d   :  { %1113 = vmatpush.msra.mxu3 %v1062_v8 }
 0x23e   :  { %v1076_v12 = vrot.slane %v1054_v50, 7  ;;  %v852_v22 = vpop.f32.mrf.mxu1  ;;  %v1061_v50 = vld [vmem:[%s1990_s4] sm:$0xff] }
 0x23f   :  { %v918_v25 = vadd.f32 %v917_v53, %v852_v22  ;;  %v938_v53 = vpop.f32.mrf.mxu2  ;;  %1114 = vmatpush.msra.mxu3 %v1061_v50 }
 0x240   :  { %v1078_v27 = vsel %vm1077_vm3, %v1076_v12, %v1053_v19 }
 0x241   :  { %v957_v28 = vadd.f32 %v1920_v26, %v918_v25 }
 0x243   :  { %v988_v36 = vsel %vm968_vm1, %v957_v28, -inf }
 0x244   :  { %v989_v11 = vmax.f32 %v987_v31, %v988_v36 }
 0x246   :  { %v990_v9 = vrot.slane %v989_v11, 4 }
 0x247   :  { %v941_v63 = vpop.f32.mrf.mxu2 }
 0x248   :  { %v991_v23 = vmax.f32 %v989_v11, %v990_v9 }
 0x24a   :  { %v992_v13 = vrot.slane %v991_v23, 2 }
 0x24c   :  { %v993_v37 = vmax.f32 %v991_v23, %v992_v13 }
 0x24e   :  { %v855_v33 = vpop.f32.mrf.mxu1  ;;  %v994_v43 = vrot.slane %v993_v37, 1 }
 0x24f   :  { %v921_v34 = vadd.f32 %v920_v61, %v855_v33 }
 0x250   :  { %v995_v48 = vmax.f32 %v993_v37, %v994_v43 }
 0x251   :  { %v958_v16 = vadd.f32 %v1915_v40, %v921_v34 }
 0x252   :  { %v1047_v51 = vadd.f32 %v1933_v5, %v995_v48 }
 0x253   :  { %v996_v44 = vsel %vm968_vm1, %v958_v16, -inf }
 0x254   :  { %v1055_v56 = vmax.f32 %v1047_v51, 0.0 }
 0x256   :  { %v858_v35 = vpop.f32.mrf.mxu1  ;;  %v1079_v59 = vrot.slane %v1055_v56, 6 }
 0x257   :  { %v924_v38 = vadd.f32 %v923_v49, %v858_v35 }
 0x258   :  { %v1081_v62 = vsel %vm1080_vm4, %v1079_v59, %v1078_v27 }
 0x259   :  { %v959_v39 = vadd.f32 %v1920_v26, %v924_v38 }
 0x25b   :  { %v997_v24 = vsel %vm968_vm1, %v959_v39, -inf }
 0x25c   :  { %v998_v46 = vmax.f32 %v996_v44, %v997_v24 }
 0x25e   :  { %v999_v47 = vrot.slane %v998_v46, 4 }
 0x260   :  { %v1000_v15 = vmax.f32 %v998_v46, %v999_v47 }
 0x262   :  { %v1001_v45 = vrot.slane %v1000_v15, 2 }
 0x264   :  { %v1002_v52 = vmax.f32 %v1000_v15, %v1001_v45 }
 0x265   :  { %v861_v10 = vpop.f32.mrf.mxu1 }
 0x266   :  { %v1003_v55 = vrot.slane %v1002_v52, 1  ;;  %v927_v41 = vadd.f32 %v926_v18, %v861_v10  ;;  %v944_v18 = vpop.f32.mrf.mxu2 }
 0x268   :  { %v1004_v57 = vmax.f32 %v1002_v52, %v1003_v55  ;;  %v960_v29 = vadd.f32 %v1915_v40, %v927_v41 }
 0x26a   :  { %v1048_v58 = vadd.f32 %v1933_v5, %v1004_v57  ;;  %v1005_v3 = vsel %vm968_vm1, %v960_v29, -inf }
 0x26c   :  { %v1056_v60 = vmax.f32 %v1048_v58, 0.0 }
 0x26d   :  { %v864_v21 = vpop.f32.mrf.mxu1 }
 0x26e   :  { %v1082_v61 = vrot.slane %v1056_v60, 5  ;;  %v930_v54 = vadd.f32 %v929_v32, %v864_v21  ;;  %v947_v33 = vpop.f32.mrf.mxu2 }
 0x270   :  { %v961_v0 = vadd.f32 %v1920_v26, %v930_v54  ;;  %v1949_v1 = vsel %vm1083_vm5, %v1082_v61, %v1081_v62 }
 0x272   :  { %v1006_v2 = vsel %vm968_vm1, %v961_v0, -inf }
 0x273   :  { %v876_v49 = vpop.f32.mrf.mxu3  ;;  %v1007_v4 = vmax.f32 %v1005_v3, %v1006_v2 }
 0x274   :  { %v942_v31 = vadd.f32 %v941_v63, %v876_v49 }
 0x275   :  { %v867_v6 = vpop.f32.mrf.mxu1  ;;  %v1008_v14 = vrot.slane %v1007_v4, 4 }
 0x276   :  { %v933_v19 = vadd.f32 %v932_v17, %v867_v6  ;;  %v965_v16 = vadd.f32 %v1920_v26, %v942_v31 }
 0x277   :  { %v1009_v20 = vmax.f32 %v1007_v4, %v1008_v14 }
 0x278   :  { %v962_v25 = vadd.f32 %v1915_v40, %v933_v19  ;;  %v1024_v48 = vsel %vm968_vm1, %v965_v16, -inf }
 0x279   :  { %v1010_v30 = vrot.slane %v1009_v20, 2 }
 0x27a   :  { %v1014_v11 = vsel %vm968_vm1, %v962_v25, -inf }
 0x27b   :  { %v879_v12 = vpop.f32.mrf.mxu3  ;;  %v1011_v17 = vmax.f32 %v1009_v20, %v1010_v30 }
 0x27c   :  { %v945_v36 = vadd.f32 %v944_v18, %v879_v12 }
 0x27d   :  { %v870_v22 = vpop.f32.mrf.mxu1  ;;  %v1012_v24 = vrot.slane %v1011_v17, 1 }
 0x27e   :  { %v936_v27 = vadd.f32 %v935_v42, %v870_v22  ;;  %v966_v13 = vadd.f32 %v1915_v40, %v945_v36 }
 0x280   :  { %v963_v28 = vadd.f32 %v1920_v26, %v936_v27  ;;  %v1032_v42 = vsel %vm968_vm1, %v966_v13, -inf }
 0x282   :  { %v1015_v32 = vsel %vm968_vm1, %v963_v28, -inf }
 0x283   :  { %v1016_v9 = vmax.f32 %v1014_v11, %v1015_v32  ;;  %v882_v23 = vpop.f32.mrf.mxu3 }
 0x284   :  { %v948_v35 = vadd.f32 %v947_v33, %v882_v23 }
 0x285   :  { %v1017_v34 = vrot.slane %v1016_v9, 4  ;;  %v873_v37 = vpop.f32.mrf.mxu1 }
 0x286   :  { %v939_v38 = vadd.f32 %v938_v53, %v873_v37  ;;  %v967_v43 = vadd.f32 %v1920_v26, %v948_v35  ;;  %v1013_v53 = vmax.f32 %v1011_v17, %v1012_v24 }
 0x287   :  { %v1018_v39 = vmax.f32 %v1016_v9, %v1017_v34 }
 0x288   :  { %v964_v44 = vadd.f32 %v1915_v40, %v939_v38  ;;  %v1033_v47 = vsel %vm968_vm1, %v967_v43, -inf  ;;  %v1049_v59 = vadd.f32 %v1933_v5, %v1013_v53 }
 0x289   :  { %v1019_v46 = vrot.slane %v1018_v39, 2  ;;  %v1034_v15 = vmax.f32 %v1032_v42, %v1033_v47 }
 0x28a   :  { %v1023_v45 = vsel %vm968_vm1, %v964_v44, -inf  ;;  %v1057_v62 = vmax.f32 %v1049_v59, 0.0 }
 0x28b   :  { %v1020_v51 = vmax.f32 %v1018_v39, %v1019_v46  ;;  %v1025_v52 = vmax.f32 %v1023_v45, %v1024_v48  ;;  %v1035_v10 = vrot.slane %v1034_v15, 4 }
 0x28c   :  { %v1085_v3 = vrot.slane %v1057_v62, 4 }
 0x28d   :  { %v1021_v55 = vrot.slane %v1020_v51, 1  ;;  %v1026_v56 = vrot.slane %v1025_v52, 4  ;;  %v1036_v26 = vmax.f32 %v1034_v15, %v1035_v10 }
 0x28e   :  { %v1087_v14 = vsel %vm1086_vm6, %v1085_v3, %v1949_v1 }
 0x28f   :  { %v1022_v57 = vmax.f32 %v1020_v51, %v1021_v55  ;;  %v1027_v40 = vmax.f32 %v1025_v52, %v1026_v56  ;;  %v1037_v58 = vrot.slane %v1036_v26, 2 }
 0x291   :  { %v1028_v60 = vrot.slane %v1027_v40, 2  ;;  %v1050_v41 = vadd.f32 %v1933_v5, %v1022_v57  ;;  %v1038_v21 = vmax.f32 %v1036_v26, %v1037_v58 }
 0x293   :  { %v1029_v61 = vmax.f32 %v1027_v40, %v1028_v60  ;;  %v1039_v54 = vrot.slane %v1038_v21, 1  ;;  %v1058_v29 = vmax.f32 %v1050_v41, 0.0 }
 0x295   :  { %v1030_v63 = vrot.slane %v1029_v61, 1  ;;  %v1040_v0 = vmax.f32 %v1038_v21, %v1039_v54  ;;  %v1088_v6 = vrot.slane %v1058_v29, 3 }
 0x297   :  { %v1031_v2 = vmax.f32 %v1029_v61, %v1030_v63  ;;  %v1052_v49 = vadd.f32 %v1933_v5, %v1040_v0  ;;  %v1090_v18 = vsel %vm1089_vm7, %v1088_v6, %v1087_v14 }
 0x299   :  { %v1051_v4 = vadd.f32 %v1933_v5, %v1031_v2  ;;  %v1060_v7 = vmax.f32 %v1052_v49, 0.0  ;;  %v1336_v5 = vld [vmem:[%s1991_s5] ss:$0 sm:$0xff] }
 0x29b   :  { %v1059_v8 = vmax.f32 %v1051_v4, 0.0  ;;  %v1094_v19 = vrot.slane %v1060_v7, 1 }
 0x29d   :  { %v1091_v50 = vrot.slane %v1059_v8, 2 }
 0x29f   :  { %v1093_v12 = vsel %vm1092_vm8, %v1091_v50, %v1090_v18 }
 0x2a0   :  { %v1096_v20 = vsel %vm1095_vm9, %v1094_v19, %v1093_v12 }
 0x2a1   :  { %1190 = vmatmul.msk.f32.vlgmr.msra.gmra.mxu3 %vm968_vm1, %v1096_v20 }
 0x324   :  { %v1116_v22 = vpop.f32.mrf.mxu3 }
 0x325   :  { %v1117_v25 = vadd.f32 %v1336_v5, %v1116_v22 }
 0x327   :  { %1119 = vst [vmem:[%s1993_s7] sm:$0xff] %v1117_v25 }
 0x328   :  { %1124 = vsyncpa [#allocation3], 1 }

</bundles_post_ra>
